<compile_context>
chip_gen: v5e
topology: v5e:2x2
jax: 0.10.0
libtpu: 0.0.40
codegen_flags: <defaults>
</compile_context>

<pallas_src>
import functools

import jax
import jax.numpy as jnp
from jax import lax
from jax.experimental import pallas as pl
from jax.experimental.pallas import tpu as pltpu

LANES = 128
SUBLANES = 8
# 4096 x 128 x f32 = 2 MiB per input per step; 2 inputs x 2 double-buffers
# = 8 MiB, comfortably inside the explicit 32 MiB VMEM limit below on every
# generation (v5e/v6e: 128 MiB physical, v7x: 64 MiB physical).
MAX_ROW_TILE = 4096
# Two-way split of the row range for the v7x megacore (2 TensorCores).  On
# single-core chips (v5e/v6e) this just becomes two sequential halves.
# TODO(synk): query the TensorCore count at trace time instead of fixing 2.
NUM_CORE_SPLITS = 2


def _round_up(x, m):
    return ((x + m - 1) // m) * m


def _combine_loss_kernel(t_ref, p_ref, out_ref, acc_sq, acc_abs, *, inv_n, n_slabs):
    """Grid = (core_split ["parallel"], reduction step ["arbitrary"]).

    t_ref, p_ref : (row_tile, 128) VMEM tiles of targets / preds
    out_ref      : (8, 128) lane-dense per-core output block, written only at
                   finalize (lane 0 = partial MSE, lane 1 = partial L1,
                   duplicated across sublanes).
    acc_sq, acc_abs : (8, 128) f32 VMEM scratch accumulators (resident per core).
    """
    step = pl.program_id(1)

    @pl.when(step == 0)
    def _init():
        acc_sq[...] = jnp.zeros_like(acc_sq)
        acc_abs[...] = jnp.zeros_like(acc_abs)

    # Slab loop: read (8,128) at a time, accumulate into loop-carried vregs.
    # Working set stays a handful of vregs (no full-tile temporaries spilled
    # to compiler-internal VMEM scratch); pure VPU work, no cross-lane ops.
    def slab_body(s, carry):
        a_sq, a_abs = carry
        r = pl.multiple_of(s * SUBLANES, SUBLANES)
        t = t_ref[pl.ds(r, SUBLANES), :].astype(jnp.float32)
        p = p_ref[pl.ds(r, SUBLANES), :].astype(jnp.float32)
        d = t - p
        return a_sq + d * d, a_abs + jnp.abs(d)

    zeros = jnp.zeros((SUBLANES, LANES), jnp.float32)
    a_sq, a_abs = lax.fori_loop(
        0, n_slabs, slab_body, (zeros, zeros), unroll=min(8, n_slabs)
    )
    acc_sq[...] += a_sq
    acc_abs[...] += a_abs

    @pl.when(step == pl.num_programs(1) - 1)
    def _finalize():
        # Single cross-lane/sublane reduce per core, scale applied once.
        mse = jnp.sum(acc_sq[...]) * inv_n
        l1 = jnp.sum(acc_abs[...]) * inv_n
        lane = jax.lax.broadcasted_iota(jnp.int32, (SUBLANES, LANES), 1)
        out_ref[...] = jnp.where(lane == 0, mse, jnp.where(lane == 1, l1, 0.0))


def combine_criterion(targets, preds):
    """Returns [mse_loss, l1_loss] as scalar float32 arrays (a list, matching
    the PyTorch module's list-of-losses return for [MSELoss(), L1Loss()])."""
    assert targets.shape == preds.shape
    n_elem = targets.size
    assert n_elem > 0

    rows = pl.cdiv(n_elem, LANES)

    # Choose tiling: as close to MAX_ROW_TILE as possible while bounding the
    # zero-padding waste to < one tile, and splitting evenly across the
    # NUM_CORE_SPLITS leading "parallel" axis.
    total_steps = max(NUM_CORE_SPLITS, pl.cdiv(rows, MAX_ROW_TILE))
    total_steps = _round_up(total_steps, NUM_CORE_SPLITS)
    row_tile = _round_up(pl.cdiv(rows, total_steps), SUBLANES)
    rows_padded = total_steps * row_tile
    steps_per_core = total_steps // NUM_CORE_SPLITS

    def to_2d(x):
        flat = x.reshape(-1)
        pad = rows_padded * LANES - n_elem
        if pad:
            # Zero-pad both inputs identically: padded diffs are exactly 0 and
            # contribute nothing to either accumulator; inv_n below uses the
            # true element count, so the means are exact.
            flat = jnp.pad(flat, (0, pad))
        return flat.reshape(rows_padded, LANES)

    # Keep native dtype (e.g. bf16) — the kernel upcasts; the pass is HBM-bound
    # so fewer input bytes is a direct wall-clock win.
    t2d = to_2d(targets)
    p2d = to_2d(preds)

    kernel = functools.partial(
        _combine_loss_kernel,
        inv_n=1.0 / float(n_elem),
        n_slabs=row_tile // SUBLANES,
    )

    grid = (NUM_CORE_SPLITS, steps_per_core)
    in_spec = pl.BlockSpec(
        (row_tile, LANES), lambda c, i: (c * steps_per_core + i, 0)
    )
    # One (8,128) output block per core split: lane-dense, distinct per core
    # (no racing on a shared resident out_ref when the leading axis runs on
    # both TensorCores).
    out_spec = pl.BlockSpec((SUBLANES, LANES), lambda c, i: (c, 0))

    out = pl.pallas_call(
        kernel,
        out_shape=jax.ShapeDtypeStruct((NUM_CORE_SPLITS * SUBLANES, LANES), jnp.float32),
        grid_spec=pltpu.PrefetchScalarGridSpec(
            num_scalar_prefetch=0,
            grid=grid,
            in_specs=[in_spec, in_spec],
            out_specs=out_spec,
            scratch_shapes=[
                pltpu.VMEM((SUBLANES, LANES), jnp.float32),
                pltpu.VMEM((SUBLANES, LANES), jnp.float32),
            ],
        ),
        compiler_params=pltpu.CompilerParams(
            # Core split is independent work (megacore-shardable on v7x);
            # the inner axis is the streaming reduction.
            dimension_semantics=("parallel", "arbitrary"),
            vmem_limit_bytes=32 << 20,
        ),
    )(t2d, p2d)

    # Per-core partials are already scaled by 1/N (linear), so summing the
    # core rows gives the exact mean losses.
    part = out.reshape(NUM_CORE_SPLITS, SUBLANES, LANES)[:, 0, :]
    mse = jnp.sum(part[:, 0])
    l1 = jnp.sum(part[:, 1])
    return [mse, l1]


if __name__ == "__main__":
    key = jax.random.PRNGKey(0)
    k1, k2 = jax.random.split(key)
    # NCHW inputs, matching what the PyTorch criteria would receive.
    targets = jax.random.normal(k1, (2, 4, 16, 16), dtype=jnp.float32)
    preds = jax.random.normal(k2, (2, 4, 16, 16), dtype=jnp.float32)

    losses = combine_criterion(targets, preds)
    losses = [jax.block_until_ready(l) for l in losses]

    # Pure-JAX reference (nn.MSELoss / nn.L1Loss with 'mean' reduction).
    ref_mse = jnp.mean((targets - preds) ** 2)
    ref_l1 = jnp.mean(jnp.abs(targets - preds))

    assert jnp.allclose(losses[0], ref_mse, rtol=1e-5, atol=1e-6), (losses[0], ref_mse)
    assert jnp.allclose(losses[1], ref_l1, rtol=1e-5, atol=1e-6), (losses[1], ref_l1)

    print("KERNEL_OK")
</pallas_src>

<mosaic_0001>
module attributes {stable_mosaic.version = 11 : i64} {
  func.func @_combine_loss_kernel(%arg0: i32, %arg1: i32, %arg2: memref<8x128xf32, #tpu.memory_space<vmem>>, %arg3: memref<8x128xf32, #tpu.memory_space<vmem>>, %arg4: memref<8x128xf32, #tpu.memory_space<vmem>>, %arg5: memref<8x128xf32, #tpu.memory_space<vmem>>, %arg6: memref<8x128xf32, #tpu.memory_space<vmem>>) attributes {dimension_semantics = [#tpu.dimension_semantics<parallel>, #tpu.dimension_semantics<arbitrary>], iteration_bounds = array<i64: 2, 1>, scalar_prefetch = 0 : i64, scratch_operands = 2 : i64, tpu.core_type = #tpu.core_type<tc>, window_params = [{transform_indices = @transform_0, window_bounds = array<i64: 8, 128>}, {transform_indices = @transform_1, window_bounds = array<i64: 8, 128>}, {transform_indices = @transform_2, window_bounds = array<i64: 8, 128>}]} {
    %c0_i32 = arith.constant 0 : i32
    %0 = arith.cmpi eq, %arg1, %c0_i32 : i32
    %1 = arith.extui %0 : i1 to i32
    %c0_i32_0 = arith.constant 0 : i32
    %2 = arith.cmpi ne, %1, %c0_i32_0 : i32
    scf.if %2 {
      %cst_13 = arith.constant 0.000000e+00 : f32
      %24 = vector.broadcast %cst_13 : f32 to vector<8x128xf32>
      %c0_14 = arith.constant 0 : index
      %c0_15 = arith.constant 0 : index
      %25 = vector.load %arg5[%c0_14, %c0_15] : memref<8x128xf32, #tpu.memory_space<vmem>>, vector<8x128xf32>
      tpu.vector_store %arg5[%c0_14, %c0_15], %24 {strides = array<i32>} : memref<8x128xf32, #tpu.memory_space<vmem>>, vector<8x128xf32>,
      %cst_16 = arith.constant 0.000000e+00 : f32
      %26 = vector.broadcast %cst_16 : f32 to vector<8x128xf32>
      %c0_17 = arith.constant 0 : index
      %c0_18 = arith.constant 0 : index
      %27 = vector.load %arg6[%c0_17, %c0_18] : memref<8x128xf32, #tpu.memory_space<vmem>>, vector<8x128xf32>
      tpu.vector_store %arg6[%c0_17, %c0_18], %26 {strides = array<i32>} : memref<8x128xf32, #tpu.memory_space<vmem>>, vector<8x128xf32>,
    } else {
    }
    %cst = arith.constant 0.000000e+00 : f32
    %3 = vector.broadcast %cst : f32 to vector<8x128xf32>
    %c0_i32_1 = arith.constant 0 : i32
    %c8_i32 = arith.constant 8 : i32
    %4 = arith.muli %c0_i32_1, %c8_i32 : i32
    %5 = tpu.assume_multiple %4, 8 : i32
    %6 = arith.index_cast %5 : i32 to index
    %c0 = arith.constant 0 : index
    %7 = vector.load %arg2[%6, %c0] : memref<8x128xf32, #tpu.memory_space<vmem>>, vector<8x128xf32>
    %8 = arith.index_cast %5 : i32 to index
    %c0_2 = arith.constant 0 : index
    %9 = vector.load %arg3[%8, %c0_2] : memref<8x128xf32, #tpu.memory_space<vmem>>, vector<8x128xf32>
    %10 = arith.subf %7, %9 : vector<8x128xf32>
    %11 = arith.mulf %10, %10 : vector<8x128xf32>
    %12 = arith.addf %3, %11 : vector<8x128xf32>
    %13 = math.absf %10 : vector<8x128xf32>
    %14 = arith.addf %3, %13 : vector<8x128xf32>
    %c1_i32 = arith.constant 1 : i32
    %c0_3 = arith.constant 0 : index
    %c0_4 = arith.constant 0 : index
    %15 = vector.load %arg5[%c0_3, %c0_4] : memref<8x128xf32, #tpu.memory_space<vmem>>, vector<8x128xf32>
    %16 = arith.addf %15, %12 : vector<8x128xf32>
    %c0_5 = arith.constant 0 : index
    %c0_6 = arith.constant 0 : index
    %17 = vector.load %arg5[%c0_5, %c0_6] : memref<8x128xf32, #tpu.memory_space<vmem>>, vector<8x128xf32>
    tpu.vector_store %arg5[%c0_5, %c0_6], %16 {strides = array<i32>} : memref<8x128xf32, #tpu.memory_space<vmem>>, vector<8x128xf32>,
    %c0_7 = arith.constant 0 : index
    %c0_8 = arith.constant 0 : index
    %18 = vector.load %arg6[%c0_7, %c0_8] : memref<8x128xf32, #tpu.memory_space<vmem>>, vector<8x128xf32>
    %19 = arith.addf %18, %14 : vector<8x128xf32>
    %c0_9 = arith.constant 0 : index
    %c0_10 = arith.constant 0 : index
    %20 = vector.load %arg6[%c0_9, %c0_10] : memref<8x128xf32, #tpu.memory_space<vmem>>, vector<8x128xf32>
    tpu.vector_store %arg6[%c0_9, %c0_10], %19 {strides = array<i32>} : memref<8x128xf32, #tpu.memory_space<vmem>>, vector<8x128xf32>,
    %c0_i32_11 = arith.constant 0 : i32
    %21 = arith.cmpi eq, %arg1, %c0_i32_11 : i32
    %22 = arith.extui %21 : i1 to i32
    %c0_i32_12 = arith.constant 0 : i32
    %23 = arith.cmpi ne, %22, %c0_i32_12 : i32
    scf.if %23 {
      %c0_13 = arith.constant 0 : index
      %c0_14 = arith.constant 0 : index
      %24 = vector.load %arg5[%c0_13, %c0_14] : memref<8x128xf32, #tpu.memory_space<vmem>>, vector<8x128xf32>
      %25 = vector.shape_cast %24 : vector<8x128xf32> to vector<1x8x128xf32>
      %cst_15 = arith.constant dense<0.000000e+00> : vector<1xf32>
      %26 = vector.multi_reduction <add>, %25, %cst_15 [1, 2] : vector<1x8x128xf32> to vector<1xf32>
      %27 = vector.shape_cast %26 : vector<1xf32> to vector<1x1x1xf32>
      %28 = vector.extract %27[0, 0, 0] : f32 from vector<1x1x1xf32>
      %cst_16 = arith.constant 4.8828125E-4 : f32
      %29 = arith.mulf %28, %cst_16 : f32
      %c0_17 = arith.constant 0 : index
      %c0_18 = arith.constant 0 : index
      %30 = vector.load %arg6[%c0_17, %c0_18] : memref<8x128xf32, #tpu.memory_space<vmem>>, vector<8x128xf32>
      %31 = vector.shape_cast %30 : vector<8x128xf32> to vector<1x8x128xf32>
      %cst_19 = arith.constant dense<0.000000e+00> : vector<1xf32>
      %32 = vector.multi_reduction <add>, %31, %cst_19 [1, 2] : vector<1x8x128xf32> to vector<1xf32>
      %33 = vector.shape_cast %32 : vector<1xf32> to vector<1x1x1xf32>
      %34 = vector.extract %33[0, 0, 0] : f32 from vector<1x1x1xf32>
      %cst_20 = arith.constant 4.8828125E-4 : f32
      %35 = arith.mulf %34, %cst_20 : f32
      %36 = tpu.iota {dimensions = array<i32: 1>} : vector<8x128xi32>
      %c0_i32_21 = arith.constant 0 : i32
      %37 = vector.broadcast %c0_i32_21 : i32 to vector<8x128xi32>
      %38 = arith.cmpi eq, %36, %37 : vector<8x128xi32>
      %c1_i32_22 = arith.constant 1 : i32
      %39 = vector.broadcast %c1_i32_22 : i32 to vector<8x128xi32>
      %40 = arith.cmpi eq, %36, %39 : vector<8x128xi32>
      %cst_23 = arith.constant 0.000000e+00 : f32
      %41 = vector.broadcast %35 : f32 to vector<8x128xf32>
      %42 = vector.broadcast %cst_23 : f32 to vector<8x128xf32>
      %43 = arith.select %40, %41, %42 : vector<8x128xi1>, vector<8x128xf32>
      %44 = vector.broadcast %29 : f32 to vector<8x128xf32>
      %45 = arith.select %38, %44, %43 : vector<8x128xi1>, vector<8x128xf32>
      %c0_24 = arith.constant 0 : index
      %c0_25 = arith.constant 0 : index
      %46 = vector.load %arg4[%c0_24, %c0_25] : memref<8x128xf32, #tpu.memory_space<vmem>>, vector<8x128xf32>
      tpu.vector_store %arg4[%c0_24, %c0_25], %45 {strides = array<i32>} : memref<8x128xf32, #tpu.memory_space<vmem>>, vector<8x128xf32>,
    } else {
    }
    return
  }
  func.func @transform_0(%arg0: i32, %arg1: i32) -> (i32, i32) {
    %c1_i32 = arith.constant 1 : i32
    %0 = arith.muli %arg0, %c1_i32 : i32
    %1 = arith.addi %0, %arg1 : i32
    %c0_i32 = arith.constant 0 : i32
    %c0_i32_0 = arith.constant 0 : i32
    return %1, %c0_i32 : i32, i32
  }
  func.func @transform_1(%arg0: i32, %arg1: i32) -> (i32, i32) {
    %c1_i32 = arith.constant 1 : i32
    %0 = arith.muli %arg0, %c1_i32 : i32
    %1 = arith.addi %0, %arg1 : i32
    %c0_i32 = arith.constant 0 : i32
    %c0_i32_0 = arith.constant 0 : i32
    return %1, %c0_i32 : i32, i32
  }
  func.func @transform_2(%arg0: i32, %arg1: i32) -> (i32, i32) {
    %c0_i32 = arith.constant 0 : i32
    %c0_i32_0 = arith.constant 0 : i32
    return %arg0, %c0_i32 : i32, i32
  }
}

</mosaic_0001>

<bundles_post_ra>
// kernel: tpu_custom_call.1
= control target key start
LH: loop header
LB: loop body
LE: loop exit
PB: predicated region body
PF: predicated region fallthrough
CT: control target
= control target key end

     0   :  { %7 = vsyncpa [#allocation5], 0  ;;  %s778_s0 = inlined_call_operand.hbm [shape: f32[16,128], index: 0, kind: input, shape index: {}]   ;;  %s779_s1 = inlined_call_operand.hbm [shape: f32[16,128], index: 1, kind: input, shape index: {}]   ;;  %s780_s2 = inlined_call_operand.hbm [shape: f32[16,128], index: 2, kind: output, shape index: {}]  }
   0x1   :  { %9 = vsyncpa [#allocation5 + $0x1], 0 }
   0x2   :  { %10 = vsyncpa [#allocation8], 0 }
   0x3   :  { %12 = vsyncpa [#allocation8 + $0x1], 0 }
   0x4   :  { %13 = vsyncpa [#allocation6], 0 }
   0x5   :  { %15 = vsyncpa [#allocation6 + $0x1], 0  ;;  %s642_s9 = smov 0   ;;  %s644_s10 = smov 0  }
   0x6   :  { %s646_s11 = smov 0   ;;  %s648_s12 = smov 0  }
   0x7   :  { %s650_s13 = smov 0   ;;  %s652_s14 = smov 0  }
   0x8 LB: > { %s392_s15 = sadd.s32 4294967295, %s625_s14   ;;  %s393_s16 = sadd.s32 4294967294, %s625_s14   ;;  %s625_s14 = sphi %s652_s14, %s21_s14   ;;  %s621_s13 = sphi %s650_s13, %s789_s13   ;;  %s617_s12 = sphi %s648_s12, %s788_s12   ;;  %s613_s11 = sphi %s646_s11, %s787_s11   ;;  %s609_s10 = sphi %s644_s10, %s786_s10   ;;  %s605_s9 = sphi %s642_s9, %s785_s9  }
   0x9   : > { %s33_s17 = sadd.s32 1, %s621_s13  ;;  %s42_s18 = sadd.s32 1, %s613_s11 }
   0xa   : > { %p35_p0 = scmp.ge.s32.totalorder %s33_s17, 2  ;;  %p49_p1 = scmp.ne.s32.totalorder %s613_s11, %s609_s10 }
   0xb   : > { %p50_p2 = scmp.eq.s32.totalorder %s625_s14, 0  ;;  %p55_p3 = scmp.ne.s32.totalorder %s609_s10, %s605_s9 }
   0xc   : > { %s791_s17 = smov (%p35_p0, %s33_s17), 0  ;;  %p56_p5 = scmp.eq.s32.totalorder %s392_s15, 0 }
   0xd   : > { %p683_p4 = por %p50_p2, %p49_p1  ;;  %s39_s20 = ssub.s32 %s621_s13, %s791_s17 }
   0xe   : > { %p107_p6 = scmp.eq.s32.totalorder %s392_s15, 1  ;;  %p40_p7 = scmp.eq.s32.totalorder %s39_s20, 0 }
   0xf   : > { %p689_p8 = por %p56_p5, %p55_p3  ;;  %p113_p10 = scmp.eq.s32.totalorder %s393_s16, 1 }
  0x10   : > { %p693_p9 = por %p107_p6, %p49_p1  ;;  %p395_p12 = scmp.ge.s32.totalorder %s625_s14, 2 }
  0x11   : > { %s698_s23 = scalar_select %p40_p7, %s613_s11, %s42_s18  }
  0x12   : > { %p700_p11 = por %p113_p10, %p55_p3  ;;  %p429_p13 = scmp.lt.s32.totalorder %s625_s14, 2 }
  0x13   : > { %s133_s25 = sand.u32 1, %s613_s11   ;;  %s397_s27 = sshll.u32 %s621_s13, 3 }
  0x14   : > { %s396_s26 = sshll.u32 %s133_s25, 3  ;;  %s142_s30 = scalar_lea.hbm %s778_s0, %s397_s27 }
  0x15   : > { %s137_s3 = scalar_lea.vmem [#allocation4], %s396_s26  ;;  %s144_s5 = sshll.u32 %s142_s30, 4  ;;  %s145_s5 = int_to_ptr.hbm [resolvable:$true] %s144_s5 }
  0x16   : > { %s146_s4 = sshll.u32 %s137_s3, 4  ;;  %p419_p0 = pnand %p429_p13, %p683_p4  ;;  %s147_s4 = int_to_ptr.vmem [resolvable:$true] %s146_s4 }
  0x17   : > { %p400_p1 = scmp.ge.s32.totalorder %s625_s14, 1  ;;  %p171_p2 = scmp.lt.s32.totalorder %s625_s14, 3 }
  0x18   : > { %s134_s6 = scalar_lea.sflag [#allocation5], %s133_s25  ;;  %s162_s15 = scalar_lea.hbm %s779_s1, %s397_s27 }
  0x19   : > { %421 = dma.hbm_to_vmem [thread:$0]  (!%p419_p0), %s145_s5, 128, %s147_s4, %s134_s6  }
  0x1a   : > { %p172_p3 = pnand %p400_p1, %p171_p2  ;;  %s157_s16 = scalar_lea.vmem [#allocation7], %s396_s26 }
  0x1b   : > { %s166_s18 = sshll.u32 %s157_s16, 4  ;;  %s164_s20 = sshll.u32 %s162_s15, 4  ;;  %s167_s18 = int_to_ptr.vmem [resolvable:$true] %s166_s18  ;;  %s165_s20 = int_to_ptr.hbm [resolvable:$true] %s164_s20 }
  0x1c   : > { %s154_s28 = scalar_lea.sflag [#allocation8], %s133_s25  ;;  %175 = sbr.rel (%p172_p3) target bundleno = 235 (0xeb), region = 28 }
  0x1d   : > { %424 = dma.hbm_to_vmem [thread:$0]  (!%p419_p0), %s165_s20, 128, %s167_s18, %s154_s28  }
  0x1e   : > { %s719_s19 = sand.u32 (!%p172_p3), 1, %s609_s10  }
  0x1f   : > { %s722_s29 = sshll.u32 (!%p172_p3), %s719_s19, 3  ;;  %s178_s30 = scalar_lea.sflag (!%p172_p3), [#allocation5], %s719_s19 }
  0x20   : > { %s181_s3 = scalar_lea.vmem (!%p172_p3), [#allocation4], %s722_s29 }
  0x21   : > { %592 = dma.done.wait (%p689_p8), %s178_s30, 128  }
  0x22   : > { %594 = vsyncadd (%p689_p8), %s178_s30, 4294967168  ;;  %s188_s25 = scalar_lea.sflag [#allocation8], %s719_s19  ;;  %s191_s26 = scalar_lea.vmem [#allocation7], %s722_s29 }
  0x23   : > { %596 = dma.done.wait (%p689_p8), %s188_s25, 128  }
  0x24   : > { %598 = vsyncadd (%p689_p8), %s188_s25, 4294967168  ;;  %v226_v0 = vld [vmem:[%s181_s3] sm:$0xff]  ;;  %v227_v1 = vld [vmem:[%s191_s26] sm:$0xff]  ;;  %v264_v19 = vlaneseq  ;;  %s405_s21 = sshll.u32 %s617_s12, 3  ;;  %s217_s7 = scalar_lea.vmem [#allocation9], %s722_s29 }
  0x25   : > { %v228_v2 = vsub.f32 %v226_v0, %v227_v1  ;;  %s284_s6 = scalar_lea.hbm %s780_s2, %s405_s21  ;;  %s741_s8 = sshll.u32 %s217_s7, 4  ;;  %s287_s8 = int_to_ptr.vmem [resolvable:$true] %s741_s8 }
  0x26   : > { %v265_v20 = vand.u32 127, %v264_v19  ;;  %s288_s20 = sshll.u32 %s284_s6, 4  ;;  %s274_s12 = scalar_lea.sflag [#allocation6], %s719_s19  ;;  %s289_s20 = int_to_ptr.hbm [resolvable:$true] %s288_s20 }
  0x27   : > { %v229_v3 = vmul.f32 %v228_v2, %v228_v2  ;;  %v231_v4 = vand.u32 2147483647, %v228_v2  ;;  %s553_s28 = sshra.s32 %s289_s20, 4  ;;  %s559_s25 = scalar_lea.hbm %s780_s2, 16  ;;  %s554_s28 = int_to_ptr.hbm [resolvable:$true] %s553_s28 }
  0x28   : > { %vm267_vm0 = vcmp.eq.s32.totalorder %v265_v20, 1  ;;  %vm266_vm1 = vcmp.eq.s32.totalorder %v265_v20, 0  ;;  %s555_s29 = scalar_lea.hbm %s554_s28, 8  ;;  %p560_p7 = scmp.lt.s32.totalorder %s554_s28, %s780_s2 }
  0x29   : > { %243 = vadd.xlane.f32.xlu0 %v229_v3  ;;  %p556_p4 = scmp.ne.s32.totalorder %s554_s28, %s555_s29  ;;  %p561_p8 = scmp.lt.s32.totalorder %s559_s25, %s555_s29 }
  0x2b   : > { %p557_p5 = pnand %p556_p4, %p693_p9  ;;  %p562_p10 = por %p561_p8, %p560_p7 }
  0x2d   : > { %p558_p6 = pneg %p557_p5 }
  0x2f   : > { %p563_p13 = pnand %p562_p10, %p558_p6 }
  0x31   : > { %254 = vadd.xlane.f32.xlu0 %v231_v4 }
  0x9c   : > { %v244_v5 = vpop.xlane.xlu0 %243 }
  0x9d   : > { %v245_v6 = vrot.slane %v244_v5, 4 }
  0x9f   : > { %v246_v7 = vadd.f32 %v245_v6, %v244_v5 }
  0xa1   : > { %v247_v8 = vrot.slane %v246_v7, 2 }
  0xa3   : > { %v248_v9 = vadd.f32 %v247_v8, %v246_v7 }
  0xa4   : > { %v255_v10 = vpop.xlane.xlu0 %254 }
  0xa5   : > { %v256_v11 = vrot.slane %v255_v10, 4  ;;  %v249_v12 = vrot.slane %v248_v9, 1 }
  0xa7   : > { %v257_v13 = vadd.f32 %v256_v11, %v255_v10  ;;  %v250_v14 = vadd.f32 %v249_v12, %v248_v9 }
  0xa9   : > { %v258_v15 = vrot.slane %v257_v13, 2  ;;  %408 = vpush %v250_v14 }
  0xab   : > { %v259_v16 = vadd.f32 %v258_v15, %v257_v13 }
  0xad   : > { %v260_v17 = vrot.slane %v259_v16, 1 }
  0xaf   : > { %v261_v18 = vadd.f32 %v260_v17, %v259_v16 }
  0xb1   : > { %410 = vpush %v261_v18 }
  0xda   : > { %s409_s27 = spop %408 }
  0xdb   : > { %s252_s15 = smul.f32 0.00048828125, %s409_s27 }
  0xdd   : > { %v270_v22 = vstv %s252_s15 }
  0xe2   : > { %s411_s16 = spop %410 }
  0xe3   : > { %s263_s18 = smul.f32 0.00048828125, %s411_s16 }
  0xe5   : > { %v268_v21 = vstv %s263_s18 }
  0xe6   : > { %v269_v23 = vsel %vm267_vm0, %v268_v21, 0.0 }
  0xe7   : > { %v271_v24 = vsel %vm266_vm1, %v270_v22, %v269_v23 }
  0xe8   : > { %272 = vst [vmem:[%s217_s7] sm:$0xff] %v271_v24 }
  0xe9   : > { %566 = shalt.err (!%p563_p13)
}
  0xea   : > { %416 = dma.vmem_to_hbm [thread:$0]  (%p693_p9), %s287_s8, 128, %s289_s20, %s274_s12  }
  0xeb PF: > { %s300_s19 = sand.u32 1, %s605_s9   ;;  %p426_p0 = pnand %p395_p12, %p700_p11 }
  0xec   : > { %s301_s27 = scalar_lea.sflag [#allocation6], %s300_s19 }
  0xed   : > { %p427_p1 = pneg %p426_p0 }
  0xef   : > { %600 = dma.done.wait (%p427_p1), %s301_s27, 128  }
  0xf0   : > { %602 = vsyncadd (%p427_p1), %s301_s27, 4294967168  ;;  %s21_s14 = sadd.s32 1, %s625_s14   ;;  %s785_s9 = smov %s609_s10 }
  0xf1   : > { %p18_p2 = scmp.ge.s32.totalorder %s21_s14, 4   ;;  %s786_s10 = smov %s613_s11 }
  0xf2   : > { %s787_s11 = smov %s698_s23  ;;  %s788_s12 = smov %s621_s13 }
  0xf3   : > { %s789_s13 = smov %s791_s17  ;;  %20 = sbr.rel (!%p18_p2) target bundleno = 8 (0x8), region = 94 }
  0xf8   :  { %307 = vsyncpa [#allocation5], 1 }
  0xf9   :  { %309 = vsyncpa [#allocation5 + $0x1], 1 }
  0xfa   :  { %310 = vsyncpa [#allocation8], 1 }
  0xfb   :  { %312 = vsyncpa [#allocation8 + $0x1], 1 }
  0xfc   :  { %313 = vsyncpa [#allocation6], 1 }
  0xfd   :  { %315 = vsyncpa [#allocation6 + $0x1], 1 }

</bundles_post_ra>
